<compile_context>
chip_gen: v5e
topology: v5e:2x2
jax: 0.10.0
libtpu: 0.0.40
codegen_flags: <defaults>
</compile_context>

<pallas_src>
import functools

import jax
import jax.numpy as jnp
from jax import lax
from jax.experimental import pallas as pl
from jax.experimental.pallas import tpu as pltpu


# Acklam's inverse normal CDF approximation coefficients.
_A = (-3.969683028665376e+01, 2.209460984245205e+02, -2.759285104469687e+02,
      1.383577518672690e+02, -3.066479806614716e+01, 2.506628277459239e+00)
_B = (-5.447609879822406e+01, 1.615858368580409e+02, -1.556989798598866e+02,
      6.680131188771972e+01, -1.328068155288572e+01)
_C = (-7.784894002430293e-03, -3.223964580411365e-01, -2.400758277161838e+00,
      -2.549732539343734e+00, 4.374664141464968e+00, 2.938163982698783e+00)
_D = (7.784695709041462e-03, 3.224671290700398e-01, 2.445134137142996e+00,
      3.754408661907416e+00)
_P_LOW = 0.02425


# ---------------------------------------------------------------------------
# Kernel
# ---------------------------------------------------------------------------

def _random_noise_kernel(seed_ref, x_ref, o_ref, *, mean, std, clamp, block_elems):
    shape = x_ref.shape                                   # (tile_r, 128)

    # ---- per-element counter (unique per element of the whole tensor) -------
    # NOTE: int32 wraps for tensors >= 2^31 elements; bit patterns stay unique
    # up to 2^32 elements, which is fine for noise generation.
    row = lax.broadcasted_iota(jnp.int32, shape, 0)
    col = lax.broadcasted_iota(jnp.int32, shape, 1)
    local = (row << 7) | col                              # row*128 + col (lanes==128)
    # Grid offset + seed mix folded into ONE scalar -> one vector add.
    offset = pl.program_id(0) * block_elems + seed_ref[0] * jnp.int32(-1640531527)
    ctr = pltpu.bitcast(local + offset, jnp.uint32)

    # ---- lowbias32 hash (uint32 arithmetic, logical shifts, no masks) -------
    h = ctr
    h = h ^ (h >> 16)
    h = h * jnp.uint32(0x7FEB352D)
    h = h ^ (h >> 15)
    h = h * jnp.uint32(0x846CA68B)
    bits = h ^ (h >> 16)

    # ---- uniform strictly inside (0, 1) via the exponent bit-trick ----------
    mant = (bits & jnp.uint32(0x007FFFFF)) | jnp.uint32(0x3F800000)
    u = pltpu.bitcast(mant, jnp.float32)                  # [1.0, 2.0)
    p = u - jnp.float32(1.0 - 2.0 ** -24)                 # [2^-24, 1 - 2^-24]

    # ---- inverse normal CDF (Acklam), std folded into the numerator ---------
    a1, a2, a3, a4, a5, a6 = (c * std for c in _A)
    b1, b2, b3, b4, b5 = _B
    c1, c2, c3, c4, c5, c6 = (c * std for c in _C)
    d1, d2, d3, d4 = _D

    qc = p - 0.5
    aq = jnp.abs(qc)
    is_tail = aq > (0.5 - _P_LOW)

    # Tail: both tails share one log/sqrt on pt = min(p, 1-p) = 0.5 - aq >= 2^-24,
    # so no log-domain guard is needed.
    q = jnp.sqrt(-2.0 * jnp.log(0.5 - aq))
    num_t = ((((c1 * q + c2) * q + c3) * q + c4) * q + c5) * q + c6   # < 0 (lower-tail form)
    den_t = (((d1 * q + d2) * q + d3) * q + d4) * q + 1.0
    # Tail sign via sign-bit xor: keep negative on the lower tail (qc < 0),
    # flip positive on the upper tail (qc > 0).
    flip = (pltpu.bitcast(qc, jnp.uint32) & jnp.uint32(0x80000000)) ^ jnp.uint32(0x80000000)
    num_t = pltpu.bitcast(pltpu.bitcast(num_t, jnp.uint32) ^ flip, jnp.float32)

    # Central branch.
    r = qc * qc
    num_c = (((((a1 * r + a2) * r + a3) * r + a4) * r + a5) * r + a6) * qc
    den_c = ((((b1 * r + b2) * r + b3) * r + b4) * r + b5) * r + 1.0

    num = jnp.where(is_tail, num_t, num_c)
    den = jnp.where(is_tail, den_t, den_c)
    # Divide moved off the VALU: EUP approximate reciprocal (error ~1e-3 rel,
    # irrelevant for augmentation noise).
    noise = num * pl.reciprocal(den, approx=True)         # = std * ndtri(p)
    if mean != 0.0:
        noise = noise + mean

    # ---- add / clamp / store -------------------------------------------------
    if o_ref.dtype == jnp.bfloat16:
        # bf16 VALU path (v6e/v7x): add/clip/store at 2 elem per 32-bit lane.
        y = x_ref[...] + noise.astype(jnp.bfloat16)
    else:
        y = x_ref[...].astype(jnp.float32) + noise
    if clamp is not None:
        y = jnp.clip(y, clamp[0], clamp[1])
    o_ref[...] = y.astype(o_ref.dtype)


# ---------------------------------------------------------------------------
# Wrapper
# ---------------------------------------------------------------------------

def random_noise(x, seed, mean=0.0, std=0.01, clamp=None):
    """Pallas equivalent of RandomNoise.forward (functional, not in-place)."""
    if isinstance(clamp, float):
        clamp = (-clamp, clamp)
    if clamp is not None:
        clamp = (float(clamp[0]), float(clamp[1]))

    orig_shape = x.shape
    dtype = x.dtype
    total = x.size

    LANES = 128
    MAX_TILE_R = 2048                                # (2048, 128) f32 = 1 MiB block

    # Lane-dense slab; no pad / slice round trip in the common NCHW case.
    if total % LANES == 0:
        xf = x.reshape(-1, LANES)
        pad = 0
    else:  # rare ragged case
        pad = LANES - (total % LANES)
        xf = jnp.pad(x.reshape(-1), (0, pad)).reshape(-1, LANES)
    rows = xf.shape[0]

    # Tile so the parallel grid axis has >= 2 steps (v7x: shard across both
    # TensorCores) while keeping blocks <= ~1 MiB and sublane-aligned.
    if rows <= 8:
        tile_r = rows                                # block == full array
    else:
        half = -(-rows // 2)                         # cdiv(rows, 2)
        half = ((half + 7) // 8) * 8                 # round up to sublane multiple
        tile_r = min(MAX_TILE_R, half, rows)
    grid_r = pl.cdiv(rows, tile_r)

    seed_arr = jnp.asarray([seed], dtype=jnp.int32)

    kernel = functools.partial(
        _random_noise_kernel,
        mean=float(mean), std=float(std), clamp=clamp,
        block_elems=tile_r * LANES,
    )

    n_elems = rows * LANES
    cost = pl.CostEstimate(
        flops=55 * n_elems,                          # ~true vector-op count/element
        transcendentals=3 * n_elems,                 # log + sqrt + approx-recip
        bytes_accessed=2 * n_elems * xf.dtype.itemsize,
    )

    out = pl.pallas_call(
        kernel,
        out_shape=jax.ShapeDtypeStruct((rows, LANES), dtype),
        grid=(grid_r,),
        in_specs=[
            pl.BlockSpec(memory_space=pltpu.MemorySpace.SMEM),      # seed scalar
            pl.BlockSpec((tile_r, LANES), lambda i: (i, 0)),        # x tile
        ],
        out_specs=pl.BlockSpec((tile_r, LANES), lambda i: (i, 0)),
        compiler_params=pltpu.CompilerParams(
            dimension_semantics=("parallel",),       # independent blocks -> megacore
        ),
        cost_estimate=cost,
    )(seed_arr, xf)

    out = out.reshape(-1)
    if pad:
        out = out[:total]
    return out.reshape(orig_shape)


# ---------------------------------------------------------------------------
# Demo / self-check
# ---------------------------------------------------------------------------

if __name__ == "__main__":
    key = jax.random.PRNGKey(0)
    x = jax.random.normal(key, (2, 4, 16, 16), dtype=jnp.float32)   # BCHW

    # Default module config: mean=0.0, std=0.01, no clamp.
    y = random_noise(x, seed=1234, mean=0.0, std=0.01, clamp=None)
    y = jax.block_until_ready(y)

    # Clamped variant (float clamp -> (-c, +c)), mirroring __init__.
    y_clamped = random_noise(x, seed=1234, mean=0.0, std=0.01, clamp=0.5)
    y_clamped = jax.block_until_ready(y_clamped)

    assert y.shape == x.shape and y.dtype == x.dtype
    noise = y - x
    noise_std = float(jnp.std(noise))
    noise_mean = float(jnp.mean(noise))
    assert bool(jnp.all(jnp.isfinite(y)))
    assert 0.005 < noise_std < 0.02, f"noise std off: {noise_std}"
    assert abs(noise_mean) < 0.005, f"noise mean off: {noise_mean}"
    assert float(jnp.max(y_clamped)) <= 0.5 + 1e-6
    assert float(jnp.min(y_clamped)) >= -0.5 - 1e-6

    print("KERNEL_OK")
</pallas_src>

<mosaic_0001>
module attributes {stable_mosaic.version = 11 : i64} {
  func.func @_random_noise_kernel(%arg0: i32, %arg1: memref<1xi32, #tpu.memory_space<smem>>, %arg2: memref<8x128xf32, #tpu.memory_space<vmem>>, %arg3: memref<8x128xf32, #tpu.memory_space<vmem>>) attributes {dimension_semantics = [#tpu.dimension_semantics<parallel>], iteration_bounds = array<i64: 2>, scalar_prefetch = 0 : i64, scratch_operands = 0 : i64, tpu.core_type = #tpu.core_type<tc>, window_params = [{transform_indices = @transform_0, window_bounds = array<i64: 1>}, {transform_indices = @transform_1, window_bounds = array<i64: 8, 128>}, {transform_indices = @transform_2, window_bounds = array<i64: 8, 128>}]} {
    %0 = tpu.iota {dimensions = array<i32: 0>} : vector<8x128xi32>
    %1 = tpu.iota {dimensions = array<i32: 1>} : vector<8x128xi32>
    %c7_i32 = arith.constant 7 : i32
    %2 = vector.broadcast %c7_i32 : i32 to vector<8x128xi32>
    %3 = arith.shli %0, %2 : vector<8x128xi32>
    %4 = arith.ori %3, %1 : vector<8x128xi32>
    %c1024_i32 = arith.constant 1024 : i32
    %5 = arith.muli %arg0, %c1024_i32 : i32
    %c0 = arith.constant 0 : index
    %6 = memref.load %arg1[%c0] : memref<1xi32, #tpu.memory_space<smem>>
    %c-1640531527_i32 = arith.constant -1640531527 : i32
    %7 = arith.muli %6, %c-1640531527_i32 : i32
    %8 = arith.addi %5, %7 : i32
    %9 = vector.broadcast %8 : i32 to vector<8x128xi32>
    %10 = arith.addi %4, %9 : vector<8x128xi32>
    %11 = tpu.bitcast %10 : vector<8x128xi32> -> vector<8x128xi32>
    %c16_i32 = arith.constant 16 : i32
    %12 = vector.broadcast %c16_i32 : i32 to vector<8x128xi32>
    %13 = arith.shrui %11, %12 : vector<8x128xi32>
    %14 = arith.xori %11, %13 : vector<8x128xi32>
    %c2146121005_i32 = arith.constant 2146121005 : i32
    %15 = vector.broadcast %c2146121005_i32 : i32 to vector<8x128xi32>
    %16 = arith.muli %14, %15 : vector<8x128xi32>
    %c15_i32 = arith.constant 15 : i32
    %17 = vector.broadcast %c15_i32 : i32 to vector<8x128xi32>
    %18 = arith.shrui %16, %17 : vector<8x128xi32>
    %19 = arith.xori %16, %18 : vector<8x128xi32>
    %c-2073254261_i32 = arith.constant -2073254261 : i32
    %20 = vector.broadcast %c-2073254261_i32 : i32 to vector<8x128xi32>
    %21 = arith.muli %19, %20 : vector<8x128xi32>
    %c16_i32_0 = arith.constant 16 : i32
    %22 = vector.broadcast %c16_i32_0 : i32 to vector<8x128xi32>
    %23 = arith.shrui %21, %22 : vector<8x128xi32>
    %24 = arith.xori %21, %23 : vector<8x128xi32>
    %c8388607_i32 = arith.constant 8388607 : i32
    %25 = vector.broadcast %c8388607_i32 : i32 to vector<8x128xi32>
    %26 = arith.andi %24, %25 : vector<8x128xi32>
    %c1065353216_i32 = arith.constant 1065353216 : i32
    %27 = vector.broadcast %c1065353216_i32 : i32 to vector<8x128xi32>
    %28 = arith.ori %26, %27 : vector<8x128xi32>
    %29 = tpu.bitcast %28 : vector<8x128xi32> -> vector<8x128xf32>
    %cst = arith.constant 0.99999994 : f32
    %30 = vector.broadcast %cst : f32 to vector<8x128xf32>
    %31 = arith.subf %29, %30 : vector<8x128xf32>
    %cst_1 = arith.constant 5.000000e-01 : f32
    %32 = vector.broadcast %cst_1 : f32 to vector<8x128xf32>
    %33 = arith.subf %31, %32 : vector<8x128xf32>
    %34 = math.absf %33 : vector<8x128xf32>
    %cst_2 = arith.constant 4.757500e-01 : f32
    %35 = vector.broadcast %cst_2 : f32 to vector<8x128xf32>
    %36 = arith.cmpf ogt, %34, %35 : vector<8x128xf32>
    %cst_3 = arith.constant 5.000000e-01 : f32
    %37 = vector.broadcast %cst_3 : f32 to vector<8x128xf32>
    %38 = arith.subf %37, %34 : vector<8x128xf32>
    %39 = math.log %38 : vector<8x128xf32>
    %cst_4 = arith.constant -2.000000e+00 : f32
    %40 = vector.broadcast %cst_4 : f32 to vector<8x128xf32>
    %41 = arith.mulf %40, %39 : vector<8x128xf32>
    %42 = math.sqrt %41 : vector<8x128xf32>
    %cst_5 = arith.constant -7.78489411E-5 : f32
    %43 = vector.broadcast %cst_5 : f32 to vector<8x128xf32>
    %44 = arith.mulf %43, %42 : vector<8x128xf32>
    %cst_6 = arith.constant -0.00322396448 : f32
    %45 = vector.broadcast %cst_6 : f32 to vector<8x128xf32>
    %46 = arith.addf %44, %45 : vector<8x128xf32>
    %47 = arith.mulf %46, %42 : vector<8x128xf32>
    %cst_7 = arith.constant -0.024007583 : f32
    %48 = vector.broadcast %cst_7 : f32 to vector<8x128xf32>
    %49 = arith.addf %47, %48 : vector<8x128xf32>
    %50 = arith.mulf %49, %42 : vector<8x128xf32>
    %cst_8 = arith.constant -0.0254973248 : f32
    %51 = vector.broadcast %cst_8 : f32 to vector<8x128xf32>
    %52 = arith.addf %50, %51 : vector<8x128xf32>
    %53 = arith.mulf %52, %42 : vector<8x128xf32>
    %cst_9 = arith.constant 0.0437466428 : f32
    %54 = vector.broadcast %cst_9 : f32 to vector<8x128xf32>
    %55 = arith.addf %53, %54 : vector<8x128xf32>
    %56 = arith.mulf %55, %42 : vector<8x128xf32>
    %cst_10 = arith.constant 0.0293816403 : f32
    %57 = vector.broadcast %cst_10 : f32 to vector<8x128xf32>
    %58 = arith.addf %56, %57 : vector<8x128xf32>
    %cst_11 = arith.constant 0.00778469583 : f32
    %59 = vector.broadcast %cst_11 : f32 to vector<8x128xf32>
    %60 = arith.mulf %59, %42 : vector<8x128xf32>
    %cst_12 = arith.constant 0.322467119 : f32
    %61 = vector.broadcast %cst_12 : f32 to vector<8x128xf32>
    %62 = arith.addf %60, %61 : vector<8x128xf32>
    %63 = arith.mulf %62, %42 : vector<8x128xf32>
    %cst_13 = arith.constant 2.44513416 : f32
    %64 = vector.broadcast %cst_13 : f32 to vector<8x128xf32>
    %65 = arith.addf %63, %64 : vector<8x128xf32>
    %66 = arith.mulf %65, %42 : vector<8x128xf32>
    %cst_14 = arith.constant 3.7544086 : f32
    %67 = vector.broadcast %cst_14 : f32 to vector<8x128xf32>
    %68 = arith.addf %66, %67 : vector<8x128xf32>
    %69 = arith.mulf %68, %42 : vector<8x128xf32>
    %cst_15 = arith.constant 1.000000e+00 : f32
    %70 = vector.broadcast %cst_15 : f32 to vector<8x128xf32>
    %71 = arith.addf %69, %70 : vector<8x128xf32>
    %72 = tpu.bitcast %33 : vector<8x128xf32> -> vector<8x128xi32>
    %c-2147483648_i32 = arith.constant -2147483648 : i32
    %73 = vector.broadcast %c-2147483648_i32 : i32 to vector<8x128xi32>
    %74 = arith.andi %72, %73 : vector<8x128xi32>
    %c-2147483648_i32_16 = arith.constant -2147483648 : i32
    %75 = vector.broadcast %c-2147483648_i32_16 : i32 to vector<8x128xi32>
    %76 = arith.xori %74, %75 : vector<8x128xi32>
    %77 = tpu.bitcast %58 : vector<8x128xf32> -> vector<8x128xi32>
    %78 = arith.xori %77, %76 : vector<8x128xi32>
    %79 = tpu.bitcast %78 : vector<8x128xi32> -> vector<8x128xf32>
    %80 = arith.mulf %33, %33 : vector<8x128xf32>
    %cst_17 = arith.constant -0.396968305 : f32
    %81 = vector.broadcast %cst_17 : f32 to vector<8x128xf32>
    %82 = arith.mulf %81, %80 : vector<8x128xf32>
    %cst_18 = arith.constant 2.20946097 : f32
    %83 = vector.broadcast %cst_18 : f32 to vector<8x128xf32>
    %84 = arith.addf %82, %83 : vector<8x128xf32>
    %85 = arith.mulf %84, %80 : vector<8x128xf32>
    %cst_19 = arith.constant -2.75928521 : f32
    %86 = vector.broadcast %cst_19 : f32 to vector<8x128xf32>
    %87 = arith.addf %85, %86 : vector<8x128xf32>
    %88 = arith.mulf %87, %80 : vector<8x128xf32>
    %cst_20 = arith.constant 1.38357747 : f32
    %89 = vector.broadcast %cst_20 : f32 to vector<8x128xf32>
    %90 = arith.addf %88, %89 : vector<8x128xf32>
    %91 = arith.mulf %90, %80 : vector<8x128xf32>
    %cst_21 = arith.constant -3.066480e-01 : f32
    %92 = vector.broadcast %cst_21 : f32 to vector<8x128xf32>
    %93 = arith.addf %91, %92 : vector<8x128xf32>
    %94 = arith.mulf %93, %80 : vector<8x128xf32>
    %cst_22 = arith.constant 0.0250662826 : f32
    %95 = vector.broadcast %cst_22 : f32 to vector<8x128xf32>
    %96 = arith.addf %94, %95 : vector<8x128xf32>
    %97 = arith.mulf %96, %33 : vector<8x128xf32>
    %cst_23 = arith.constant -54.4760971 : f32
    %98 = vector.broadcast %cst_23 : f32 to vector<8x128xf32>
    %99 = arith.mulf %98, %80 : vector<8x128xf32>
    %cst_24 = arith.constant 161.585831 : f32
    %100 = vector.broadcast %cst_24 : f32 to vector<8x128xf32>
    %101 = arith.addf %99, %100 : vector<8x128xf32>
    %102 = arith.mulf %101, %80 : vector<8x128xf32>
    %cst_25 = arith.constant -155.698975 : f32
    %103 = vector.broadcast %cst_25 : f32 to vector<8x128xf32>
    %104 = arith.addf %102, %103 : vector<8x128xf32>
    %105 = arith.mulf %104, %80 : vector<8x128xf32>
    %cst_26 = arith.constant 66.8013153 : f32
    %106 = vector.broadcast %cst_26 : f32 to vector<8x128xf32>
    %107 = arith.addf %105, %106 : vector<8x128xf32>
    %108 = arith.mulf %107, %80 : vector<8x128xf32>
    %cst_27 = arith.constant -13.2806816 : f32
    %109 = vector.broadcast %cst_27 : f32 to vector<8x128xf32>
    %110 = arith.addf %108, %109 : vector<8x128xf32>
    %111 = arith.mulf %110, %80 : vector<8x128xf32>
    %cst_28 = arith.constant 1.000000e+00 : f32
    %112 = vector.broadcast %cst_28 : f32 to vector<8x128xf32>
    %113 = arith.addf %111, %112 : vector<8x128xf32>
    %114 = arith.select %36, %79, %97 : vector<8x128xi1>, vector<8x128xf32>
    %115 = arith.select %36, %71, %113 : vector<8x128xi1>, vector<8x128xf32>
    %116 = tpu.reciprocal %115 {approx = true} : vector<8x128xf32> -> vector<8x128xf32>
    %117 = arith.mulf %114, %116 : vector<8x128xf32>
    %c0_29 = arith.constant 0 : index
    %c0_30 = arith.constant 0 : index
    %118 = vector.load %arg2[%c0_29, %c0_30] : memref<8x128xf32, #tpu.memory_space<vmem>>, vector<8x128xf32>
    %119 = arith.addf %118, %117 : vector<8x128xf32>
    %c0_31 = arith.constant 0 : index
    %c0_32 = arith.constant 0 : index
    %120 = vector.load %arg3[%c0_31, %c0_32] : memref<8x128xf32, #tpu.memory_space<vmem>>, vector<8x128xf32>
    tpu.vector_store %arg3[%c0_31, %c0_32], %119 {strides = array<i32>} : memref<8x128xf32, #tpu.memory_space<vmem>>, vector<8x128xf32>,
    return
  }
  func.func @transform_0(%arg0: i32) -> i32 {
    %c0_i32 = arith.constant 0 : i32
    %c0_i32_0 = arith.constant 0 : i32
    return %c0_i32 : i32
  }
  func.func @transform_1(%arg0: i32) -> (i32, i32) {
    %c0_i32 = arith.constant 0 : i32
    %c0_i32_0 = arith.constant 0 : i32
    return %arg0, %c0_i32 : i32, i32
  }
  func.func @transform_2(%arg0: i32) -> (i32, i32) {
    %c0_i32 = arith.constant 0 : i32
    %c0_i32_0 = arith.constant 0 : i32
    return %arg0, %c0_i32 : i32, i32
  }
}

</mosaic_0001>

<bundles_post_ra>
// kernel: tpu_custom_call.1
= control target key start
LH: loop header
LB: loop body
LE: loop exit
PB: predicated region body
PF: predicated region fallthrough
CT: control target
= control target key end

     0   :  { %s669_s0 = inlined_call_operand.<no memory space> [shape: s32[1], index: 0, kind: input, shape index: {}]   ;;  %s670_s1 = inlined_call_operand.hbm [shape: f32[16,128], index: 1, kind: input, shape index: {}]   ;;  %s671_s2 = inlined_call_operand.hbm [shape: f32[16,128], index: 2, kind: output, shape index: {}]  }
   0x1   :  { %7 = sst [smem:[#allocation2]] %s669_s0 }
   0x2   :  { %8 = vsyncpa [#allocation4], 0 }
   0x3   :  { %10 = vsyncpa [#allocation4 + $0x1], 0 }
   0x4   :  { %11 = vsyncpa [#allocation5], 0 }
   0x5   :  { %13 = vsyncpa [#allocation5 + $0x1], 0  ;;  %s527_s11 = smov 0   ;;  %s529_s12 = smov 0  }
   0x6   :  { %s531_s13 = smov 0   ;;  %s533_s14 = smov 0  }
   0x7 LB: > { %s548_s0 = sadd.s32 4294967295, %s507_s14   ;;  %s344_s15 = sadd.s32 4294967294, %s507_s14   ;;  %s507_s14 = sphi %s533_s14, %s681_s14   ;;  %s503_s13 = sphi %s531_s13, %s680_s13   ;;  %s499_s12 = sphi %s529_s12, %s679_s12   ;;  %s495_s11 = sphi %s527_s11, %s678_s11  }
   0x8   : > { %s552_s16 = sadd.s32 1, %s507_s14   ;;  %s47_s17 = sadd.s32 1, %s503_s13 }
   0x9   : > { %s44_s18 = ssub.s32 %s507_s14, %s552_s16  ;;  %p54_p0 = scmp.ne.s32.totalorder %s503_s13, %s499_s12 }
   0xa   : > { %p45_p1 = scmp.eq.s32.totalorder %s44_s18, 0  ;;  %p55_p2 = scmp.eq.s32.totalorder %s507_s14, 0 }
   0xb   : > { %p60_p3 = scmp.ne.s32.totalorder %s499_s12, %s495_s11  ;;  %p61_p4 = scmp.eq.s32.totalorder %s548_s0, 0 }
   0xc   : > { %s564_s19 = scalar_select %p45_p1, %s503_s13, %s47_s17  }
   0xd   : > { %p566_p5 = por %p55_p2, %p54_p0  ;;  %p570_p6 = por %p61_p4, %p60_p3 }
   0xe   : > { %p84_p7 = scmp.eq.s32.totalorder %s548_s0, 1  ;;  %p90_p8 = scmp.eq.s32.totalorder %s344_s15, 1 }
   0xf   : > { %p371_p10 = scmp.lt.s32.totalorder %s507_s14, 2  ;;  %s113_s24 = sand.u32 1, %s503_s13  }
  0x10   : > { %p577_p11 = por %p84_p7, %p54_p0  ;;  %p581_p12 = por %p90_p8, %p60_p3 }
  0x11   : > { %s348_s25 = sshll.u32 %s507_s14, 3  ;;  %s347_s26 = sshll.u32 %s113_s24, 3 }
  0x12   : > { %s121_s29 = scalar_lea.hbm %s670_s1, %s348_s25  ;;  %s117_s3 = scalar_lea.vmem [#allocation3], %s347_s26 }
  0x13   : > { %s123_s30 = sshll.u32 %s121_s29, 4  ;;  %s125_s4 = sshll.u32 %s117_s3, 4  ;;  %s124_s30 = int_to_ptr.hbm [resolvable:$true] %s123_s30  ;;  %s126_s4 = int_to_ptr.vmem [resolvable:$true] %s125_s4 }
  0x14   : > { %p592_p13 = pnand %p371_p10, %p566_p5  ;;  %p349_p0 = scmp.ge.s32.totalorder %s507_s14, 1 }
  0x15   : > { %p130_p1 = scmp.lt.s32.totalorder %s507_s14, 3  ;;  %s114_s6 = scalar_lea.sflag [#allocation4], %s113_s24 }
  0x16   : > { %s411_s7 = sshra.s32 %s124_s30, 4  ;;  %p415_p3 = pneg %p592_p13  ;;  %s412_s7 = int_to_ptr.hbm [resolvable:$true] %s411_s7 }
  0x17   : > { %s413_s8 = scalar_lea.hbm %s412_s7, 8  ;;  %s418_s15 = scalar_lea.hbm %s670_s1, 16 }
  0x18   : > { %p414_p2 = scmp.ne.s32.totalorder %s412_s7, %s413_s8  ;;  %p419_p5 = scmp.lt.s32.totalorder %s412_s7, %s670_s1 }
  0x19   : > { %p420_p8 = scmp.lt.s32.totalorder %s418_s15, %s413_s8 }
  0x1a   : > { %p416_p4 = pnand %p415_p3, %p414_p2 }
  0x1b   : > { %p421_p10 = por %p420_p8, %p419_p5 }
  0x1c   : > { %p417_p7 = pneg %p416_p4 }
  0x1e   : > { %p422_p9 = pnand %p421_p10, %p417_p7 }
  0x20   : > { %425 = shalt.err (!%p422_p9)
}
  0x21   : > { %366 = dma.hbm_to_vmem [thread:$0]  (!%p592_p13), %s124_s30, 128, %s126_s4, %s114_s6  }
  0x22   : > { %p131_p2 = pnand %p349_p0, %p130_p1 }
  0x23   : > { %s613_s20 = sand.u32 (!%p131_p2), 1, %s499_s12  }
  0x24   : > { %134 = sbr.rel (%p131_p2) target bundleno = 145 (0x91), region = 28  ;;  %s350_s24 = sshll.u32 (!%p131_p2), %s613_s20, 3 }
  0x25   : > { %s137_s25 = scalar_lea.sflag (!%p131_p2), [#allocation4], %s613_s20  ;;  %s619_s26 = scalar_lea.vmem (!%p131_p2), [#allocation3], %s350_s24 }
  0x29   : > { %486 = dma.done.wait (%p570_p6), %s137_s25, 128  }
  0x2a   : > { %488 = vsyncadd (%p570_p6), %s137_s25, 4294967168  ;;  %v162_v0 = vlaneseq  ;;  %s169_s27 = sld [smem:[#allocation2]]  ;;  %s352_s28 = sshll.u32 %s548_s0, 10 }
  0x2b   : > { %s356_s21 = sshll.u32 %s548_s0, 3  ;;  %s161_s6 = scalar_lea.vmem [#allocation6], %s350_s24 }
  0x2c   : > { %v163_v1 = vshrl.u32 %v162_v0, 7  ;;  %v165_v2 = vand.u32 127, %v162_v0  ;;  %s269_s5 = scalar_lea.hbm %s671_s2, %s356_s21  ;;  %s271_s7 = sshll.u32 %s161_s6, 4  ;;  %s272_s7 = int_to_ptr.vmem [resolvable:$true] %s271_s7 }
  0x2d   : > { %s273_s8 = sshll.u32 %s269_s5, 4  ;;  %s259_s0 = scalar_lea.sflag [#allocation5], %s613_s20  ;;  %s274_s8 = int_to_ptr.hbm [resolvable:$true] %s273_s8 }
  0x2e   : > { %v166_v3 = vshll.u32 %v163_v1, 7  ;;  %s455_s9 = sshra.s32 %s274_s8, 4  ;;  %s461_s18 = scalar_lea.hbm %s671_s2, 16  ;;  %s456_s9 = int_to_ptr.hbm [resolvable:$true] %s455_s9 }
  0x2f   : > { %s457_s10 = scalar_lea.hbm %s456_s9, 8  ;;  %p462_p0 = scmp.lt.s32.totalorder %s456_s9, %s671_s2 }
  0x30   : > { %v167_v4 = vor.u32 %v166_v3, %v165_v2  ;;  %s170_s29 = smul.u32 2654435769, %s169_s27  ;;  %p458_p6 = scmp.ne.s32.totalorder %s456_s9, %s457_s10 }
  0x31   : > { %p463_p1 = scmp.lt.s32.totalorder %s461_s18, %s457_s10 }
  0x32   : > { %s171_s30 = sadd.s32 %s352_s28, %s170_s29  ;;  %p459_p9 = pnand %p458_p6, %p577_p11 }
  0x33   : > { %v172_v5 = vstv %s171_s30  ;;  %p464_p3 = por %p463_p1, %p462_p0 }
  0x34   : > { %v173_v6 = vadd.s32 %v172_v5, %v167_v4  ;;  %p460_p13 = pneg %p459_p9 }
  0x36   : > { %v174_v7 = vshrl.u32 %v173_v6, 16  ;;  %p465_p4 = pnand %p464_p3, %p460_p13 }
  0x38   : > { %v175_v8 = vxor.u32 %v174_v7, %v173_v6 }
  0x3a   : > { %v176_v9 = vmul.u32 2146121005, %v175_v8 }
  0x3c   : > { %v177_v10 = vshrl.u32 %v176_v9, 15 }
  0x3e   : > { %v178_v11 = vxor.u32 %v177_v10, %v176_v9 }
  0x40   : > { %v179_v12 = vmul.u32 2221713035, %v178_v11 }
  0x42   : > { %v180_v13 = vshrl.u32 %v179_v12, 16 }
  0x44   : > { %v181_v14 = vxor.u32 %v180_v13, %v179_v12 }
  0x46   : > { %v182_v15 = vand.u32 8388607, %v181_v14 }
  0x48   : > { %v183_v16 = vor.u32 1065353216, %v182_v15 }
  0x4a   : > { %v353_v17 = vadd.f32 -0.99999994, %v183_v16  ;;  %v255_v16 = vld [vmem:[%s619_s26] sm:$0xff] }
  0x4c   : > { %v626_v18 = vadd.f32 -0.5, %v353_v17 }
  0x4e   : > { %v187_v19 = vand.u32 2147483647, %v626_v18  ;;  %v229_v21 = vmul.f32 %v626_v18, %v626_v18  ;;  %v224_v3 = vand.u32 2147483648, %v626_v18 }
  0x50   : > { %v189_v20 = vsub.f32 0.5, %v187_v19  ;;  %v241_v24 = vmul.f32 -54.476097, %v229_v21  ;;  %v230_v26 = vmul.f32 -0.3969683, %v229_v21  ;;  %v225_v9 = vxor.u32 2147483648, %v224_v3 }
  0x51   : > { %vm188_vm2 = vcmp.gt.f32.partialorder %v187_v19, 0.47575 }
  0x52   : > { %405 = vlog2.f32 %v189_v20  ;;  %v242_v27 = vadd.f32 161.58583, %v241_v24  ;;  %v231_v28 = vadd.f32 2.209461, %v230_v26 }
  0x54   : > { %v243_v29 = vmul.f32 %v242_v27, %v229_v21  ;;  %v232_v32 = vmul.f32 %v231_v28, %v229_v21 }
  0x56   : > { %v244_v34 = vadd.f32 -155.69897, %v243_v29  ;;  %v233_v36 = vadd.f32 -2.7592852, %v232_v32 }
  0x58   : > { %v406_v22 = vpop.eup %405  ;;  %v245_v38 = vmul.f32 %v244_v34, %v229_v21  ;;  %v234_v40 = vmul.f32 %v233_v36, %v229_v21 }
  0x59   : > { %v191_v23 = vmul.f32 0.6931472, %v406_v22 }
  0x5a   : > { %v246_v43 = vadd.f32 66.801315, %v245_v38  ;;  %v235_v45 = vadd.f32 1.3835775, %v234_v40 }
  0x5b   : > { %v192_v25 = vmul.f32 -2.0, %v191_v23 }
  0x5c   : > { %v247_v49 = vmul.f32 %v246_v43, %v229_v21  ;;  %v236_v52 = vmul.f32 %v235_v45, %v229_v21 }
  0x5d   : > { %407 = vrsqrt.f32 %v192_v25  ;;  %vm200_vm0 = vcmp.eq.f32.partialorder %v192_v25, inf  ;;  %v203_v41 = vand.u32 2147483648, %v192_v25  ;;  %vm202_vm1 = vcmp.eq.f32.partialorder %v192_v25, 0.0 }
  0x5e   : > { %v248_v55 = vadd.f32 -13.280682, %v247_v49  ;;  %v237_v58 = vadd.f32 -0.306648, %v236_v52 }
  0x60   : > { %v249_v61 = vmul.f32 %v248_v55, %v229_v21  ;;  %v238_v0 = vmul.f32 %v237_v58, %v229_v21 }
  0x62   : > { %v250_v4 = vadd.f32 1.0, %v249_v61  ;;  %v239_v7 = vadd.f32 0.025066283, %v238_v0 }
  0x63   : > { %v408_v30 = vpop.eup %407 }
  0x64   : > { %v194_v31 = vmul.f32 %v408_v30, %v192_v25  ;;  %v240_v12 = vmul.f32 %v626_v18, %v239_v7 }
  0x66   : > { %v195_v33 = vmul.f32 %v408_v30, %v194_v31 }
  0x68   : > { %v196_v35 = vmul.f32 0.5, %v195_v33 }
  0x6a   : > { %v197_v37 = vsub.f32 1.5, %v196_v35 }
  0x6c   : > { %v198_v39 = vmul.f32 %v408_v30, %v197_v37 }
  0x6e   : > { %v199_v42 = vmul.f32 %v198_v39, %v192_v25 }
  0x70   : > { %v201_v44 = vsel %vm200_vm0, %v192_v25, %v199_v42 }
  0x71   : > { %v204_v46 = vsel %vm202_vm1, %v203_v41, %v201_v44 }
  0x72   : > { %v205_v47 = vmul.f32 -7.784894e-05, %v204_v46  ;;  %v215_v48 = vmul.f32 0.007784696, %v204_v46 }
  0x74   : > { %v206_v50 = vadd.f32 -0.0032239645, %v205_v47  ;;  %v216_v51 = vadd.f32 0.32246712, %v215_v48 }
  0x76   : > { %v207_v53 = vmul.f32 %v206_v50, %v204_v46  ;;  %v217_v54 = vmul.f32 %v216_v51, %v204_v46 }
  0x78   : > { %v208_v56 = vadd.f32 -0.024007583, %v207_v53  ;;  %v218_v57 = vadd.f32 2.4451342, %v217_v54 }
  0x7a   : > { %v209_v59 = vmul.f32 %v208_v56, %v204_v46  ;;  %v219_v60 = vmul.f32 %v218_v57, %v204_v46 }
  0x7c   : > { %v210_v62 = vadd.f32 -0.025497325, %v209_v59  ;;  %v220_v63 = vadd.f32 3.7544086, %v219_v60 }
  0x7e   : > { %v211_v1 = vmul.f32 %v210_v62, %v204_v46  ;;  %v221_v2 = vmul.f32 %v220_v63, %v204_v46 }
  0x80   : > { %v212_v5 = vadd.f32 0.043746643, %v211_v1  ;;  %v222_v6 = vadd.f32 1.0, %v221_v2 }
  0x82   : > { %v213_v8 = vmul.f32 %v212_v5, %v204_v46  ;;  %v252_v10 = vsel %vm188_vm2, %v222_v6, %v250_v4 }
  0x83   : > { %409 = vrcp.f32 %v252_v10 }
  0x84   : > { %v214_v11 = vadd.f32 0.02938164, %v213_v8 }
  0x86   : > { %v227_v13 = vxor.u32 %v225_v9, %v214_v11 }
  0x88   : > { %v251_v14 = vsel %vm188_vm2, %v227_v13, %v240_v12 }
  0x89   : > { %v410_v15 = vpop.eup %409 }
  0x8a   : > { %v254_v17 = vmul.f32 %v410_v15, %v251_v14 }
  0x8c   : > { %v256_v19 = vadd.f32 %v255_v16, %v254_v17 }
  0x8e   : > { %257 = vst [vmem:[%s161_s6] sm:$0xff] %v256_v19 }
  0x8f   : > { %468 = shalt.err (!%p465_p4)
}
  0x90   : > { %361 = dma.vmem_to_hbm [thread:$0]  (%p577_p11), %s272_s7, 128, %s274_s8, %s259_s0  }
  0x91 PF: > { %s285_s20 = sand.u32 1, %s495_s11   ;;  %p677_p7 = scmp.ge.s32.totalorder %s507_s14, 2 }
  0x92   : > { %s286_s26 = scalar_lea.sflag [#allocation5], %s285_s20 }
  0x93   : > { %p368_p5 = pnand %p677_p7, %p581_p12 }
  0x95   : > { %p369_p8 = pneg %p368_p5 }
  0x97   : > { %490 = dma.done.wait (%p369_p8), %s286_s26, 128  }
  0x98   : > { %492 = vsyncadd (%p369_p8), %s286_s26, 4294967168  ;;  %p16_p10 = scmp.ge.s32.totalorder %s552_s16, 4   ;;  %s678_s11 = smov %s499_s12 }
  0x99   : > { %s679_s12 = smov %s503_s13  ;;  %s680_s13 = smov %s564_s19 }
  0x9a   : > { %s681_s14 = smov %s552_s16  ;;  %18 = sbr.rel (!%p16_p10) target bundleno = 7 (0x7), region = 73 }
  0x9f   :  { %292 = vsyncpa [#allocation4], 1 }
  0xa0   :  { %294 = vsyncpa [#allocation4 + $0x1], 1 }
  0xa1   :  { %295 = vsyncpa [#allocation5], 1 }
  0xa2   :  { %297 = vsyncpa [#allocation5 + $0x1], 1 }

</bundles_post_ra>
